<compile_context>
chip_gen: v6e
topology: v6e:2x2x1
jax: 0.10.0
libtpu: 0.0.40
codegen_flags: <defaults>
</compile_context>

<pallas_src>
import jax
import jax.numpy as jnp
from jax.experimental import pallas as pl
from jax.experimental.pallas import tpu as pltpu


_LANES = 128
_MAX_TILE_ROWS = 2048  # 3 * 2048 * 128 * 4 B ~= 3 MiB per block


def _weights(agreement):
    if agreement == "BT601":
        return 0.299, 0.587, 0.114
    elif agreement == "BT709":
        # NOTE: 0.0772 matches the PyTorch source (ITU-R BT.709 would be 0.0722).
        return 0.2126, 0.7152, 0.0772
    elif agreement == "BT2020":
        return 0.2627, 0.678, 0.0593
    raise ValueError(agreement)


def _make_rgb2yuv_kernel(wr, wg, wb, umax, vmax):
    y_scale = 219.0 / 255.0
    y_off = 16.0 / 255.0
    c_scale = 224.0 / 255.0
    c_off = 128.0 / 255.0
    cb_gain = umax / (1.0 - wb) * c_scale
    cr_gain = vmax / (1.0 - wr) * c_scale

    def kernel(rgb_ref, out_ref):
        # rgb_ref / out_ref: (1, 3, tile_rows, 128) VMEM tiles.
        r = jnp.clip(rgb_ref[0, 0, :, :], 0.0, 1.0)
        g = jnp.clip(rgb_ref[0, 1, :, :], 0.0, 1.0)
        b = jnp.clip(rgb_ref[0, 2, :, :], 0.0, 1.0)

        y = (r * wr + g * wg + b * wb) * y_scale + y_off
        cb = (b - y) * cb_gain + c_off
        cr = (r - y) * cr_gain + c_off

        out_ref[0, 0, :, :] = y
        out_ref[0, 1, :, :] = cb
        out_ref[0, 2, :, :] = cr

    return kernel


def rgb2yuv_pallas(rgb, agreement="BT601"):
    wr, wg, wb = _weights(agreement)
    vmax, umax = (0.5, 0.5)

    N, C, H, W = rgb.shape
    assert C == 3, "expected 3 input channels (RGB)"

    total = H * W
    rows_total = pl.cdiv(total, _LANES)

    if rows_total <= _MAX_TILE_ROWS:
        # Single spatial tile: block's second-to-last dim equals the full
        # array dim, so no multiple-of-8 padding is required.
        tile_rows = rows_total
        rows_padded = rows_total
    else:
        tile_rows = _MAX_TILE_ROWS
        rows_padded = pl.cdiv(rows_total, tile_rows) * tile_rows

    padded_total = rows_padded * _LANES
    num_tiles = rows_padded // tile_rows

    # Flatten spatial dims to a lane-dense last axis; pad only if needed.
    x = rgb.reshape(N, 3, total)
    if padded_total != total:
        x = jnp.pad(x, ((0, 0), (0, 0), (0, padded_total - total)))
    x = x.reshape(N, 3, rows_padded, _LANES)

    kernel = _make_rgb2yuv_kernel(wr, wg, wb, umax, vmax)

    out = pl.pallas_call(
        kernel,
        out_shape=jax.ShapeDtypeStruct((N, 3, rows_padded, _LANES), rgb.dtype),
        grid_spec=pltpu.PrefetchScalarGridSpec(
            num_scalar_prefetch=0,
            grid=(N, num_tiles),
            in_specs=[
                pl.BlockSpec((1, 3, tile_rows, _LANES), lambda n, t: (n, 0, t, 0))
            ],
            out_specs=pl.BlockSpec(
                (1, 3, tile_rows, _LANES), lambda n, t: (n, 0, t, 0)
            ),
        ),
        compiler_params=pltpu.CompilerParams(
            dimension_semantics=("parallel", "parallel")
        ),
    )(x)

    out = out.reshape(N, 3, padded_total)[:, :, :total].reshape(N, 3, H, W)
    return out


def rgb2yuv_ref(rgb, agreement="BT601"):
    # Pure-JAX reference mirroring the PyTorch forward exactly.
    wr, wg, wb = _weights(agreement)
    vmax, umax = (0.5, 0.5)
    r = jnp.clip(rgb[:, 0:1, :, :], 0.0, 1.0)
    g = jnp.clip(rgb[:, 1:2, :, :], 0.0, 1.0)
    b = jnp.clip(rgb[:, 2:3, :, :], 0.0, 1.0)
    y = (r * wr + g * wg + b * wb) * (219.0 / 255.0) + 16.0 / 255.0
    cb = (b - y) * umax / (1.0 - wb) * (224.0 / 255.0) + 128.0 / 255.0
    cr = (r - y) * vmax / (1.0 - wr) * (224.0 / 255.0) + 128.0 / 255.0
    return jnp.concatenate((y, cb, cr), axis=1)


if __name__ == "__main__":
    key = jax.random.PRNGKey(0)

    # Case 1: small NCHW batch; values slightly outside [0,1] to exercise clamp.
    # H*W = 256 is already a multiple of 128 -> no padding path.
    x1 = jax.random.uniform(
        key, (2, 3, 16, 16), dtype=jnp.float32, minval=-0.2, maxval=1.2
    )
    out1 = jax.block_until_ready(rgb2yuv_pallas(x1))
    ref1 = rgb2yuv_ref(x1)
    assert out1.shape == (2, 3, 16, 16)
    assert jnp.allclose(out1, ref1, atol=1e-6, rtol=1e-6), "mismatch vs reference (case 1)"

    # Case 2: H*W not a multiple of 128 -> exercises the padding/slice path.
    k2 = jax.random.PRNGKey(1)
    x2 = jax.random.uniform(
        k2, (1, 3, 20, 20), dtype=jnp.float32, minval=-0.2, maxval=1.2
    )
    out2 = jax.block_until_ready(rgb2yuv_pallas(x2, agreement="BT709"))
    ref2 = rgb2yuv_ref(x2, agreement="BT709")
    assert out2.shape == (1, 3, 20, 20)
    assert jnp.allclose(out2, ref2, atol=1e-6, rtol=1e-6), "mismatch vs reference (case 2)"

    print("KERNEL_OK")
</pallas_src>

<mosaic_0001>
module attributes {stable_mosaic.version = 11 : i64} {
  func.func @kernel(%arg0: i32, %arg1: i32, %arg2: memref<1x3x2x128xf32, #tpu.memory_space<vmem>>, %arg3: memref<1x3x2x128xf32, #tpu.memory_space<vmem>>) attributes {dimension_semantics = [#tpu.dimension_semantics<parallel>, #tpu.dimension_semantics<parallel>], iteration_bounds = array<i64: 2, 1>, scalar_prefetch = 0 : i64, scratch_operands = 0 : i64, tpu.core_type = #tpu.core_type<tc>, window_params = [{transform_indices = @transform_0, window_bounds = array<i64: 1, 3, 2, 128>}, {transform_indices = @transform_1, window_bounds = array<i64: 1, 3, 2, 128>}]} {
    %c0 = arith.constant 0 : index
    %c0_0 = arith.constant 0 : index
    %c0_1 = arith.constant 0 : index
    %c0_2 = arith.constant 0 : index
    %0 = vector.load %arg2[%c0, %c0_0, %c0_1, %c0_2] : memref<1x3x2x128xf32, #tpu.memory_space<vmem>>, vector<1x1x2x128xf32>
    %1 = vector.shape_cast %0 : vector<1x1x2x128xf32> to vector<2x128xf32>
    %cst = arith.constant 0.000000e+00 : f32
    %cst_3 = arith.constant 1.000000e+00 : f32
    %2 = vector.broadcast %cst : f32 to vector<2x128xf32>
    %3 = arith.maximumf %2, %1 : vector<2x128xf32>
    %4 = vector.broadcast %cst_3 : f32 to vector<2x128xf32>
    %5 = arith.minimumf %4, %3 : vector<2x128xf32>
    %c0_4 = arith.constant 0 : index
    %c1 = arith.constant 1 : index
    %c0_5 = arith.constant 0 : index
    %c0_6 = arith.constant 0 : index
    %6 = vector.load %arg2[%c0_4, %c1, %c0_5, %c0_6] : memref<1x3x2x128xf32, #tpu.memory_space<vmem>>, vector<1x1x2x128xf32>
    %7 = vector.shape_cast %6 : vector<1x1x2x128xf32> to vector<2x128xf32>
    %cst_7 = arith.constant 0.000000e+00 : f32
    %cst_8 = arith.constant 1.000000e+00 : f32
    %8 = vector.broadcast %cst_7 : f32 to vector<2x128xf32>
    %9 = arith.maximumf %8, %7 : vector<2x128xf32>
    %10 = vector.broadcast %cst_8 : f32 to vector<2x128xf32>
    %11 = arith.minimumf %10, %9 : vector<2x128xf32>
    %c0_9 = arith.constant 0 : index
    %c2 = arith.constant 2 : index
    %c0_10 = arith.constant 0 : index
    %c0_11 = arith.constant 0 : index
    %12 = vector.load %arg2[%c0_9, %c2, %c0_10, %c0_11] : memref<1x3x2x128xf32, #tpu.memory_space<vmem>>, vector<1x1x2x128xf32>
    %13 = vector.shape_cast %12 : vector<1x1x2x128xf32> to vector<2x128xf32>
    %cst_12 = arith.constant 0.000000e+00 : f32
    %cst_13 = arith.constant 1.000000e+00 : f32
    %14 = vector.broadcast %cst_12 : f32 to vector<2x128xf32>
    %15 = arith.maximumf %14, %13 : vector<2x128xf32>
    %16 = vector.broadcast %cst_13 : f32 to vector<2x128xf32>
    %17 = arith.minimumf %16, %15 : vector<2x128xf32>
    %cst_14 = arith.constant 2.990000e-01 : f32
    %18 = vector.broadcast %cst_14 : f32 to vector<2x128xf32>
    %19 = arith.mulf %5, %18 : vector<2x128xf32>
    %cst_15 = arith.constant 5.870000e-01 : f32
    %20 = vector.broadcast %cst_15 : f32 to vector<2x128xf32>
    %21 = arith.mulf %11, %20 : vector<2x128xf32>
    %22 = arith.addf %19, %21 : vector<2x128xf32>
    %cst_16 = arith.constant 1.140000e-01 : f32
    %23 = vector.broadcast %cst_16 : f32 to vector<2x128xf32>
    %24 = arith.mulf %17, %23 : vector<2x128xf32>
    %25 = arith.addf %22, %24 : vector<2x128xf32>
    %cst_17 = arith.constant 0.858823538 : f32
    %26 = vector.broadcast %cst_17 : f32 to vector<2x128xf32>
    %27 = arith.mulf %25, %26 : vector<2x128xf32>
    %cst_18 = arith.constant 6.274510e-02 : f32
    %28 = vector.broadcast %cst_18 : f32 to vector<2x128xf32>
    %29 = arith.addf %27, %28 : vector<2x128xf32>
    %30 = arith.subf %17, %29 : vector<2x128xf32>
    %cst_19 = arith.constant 0.495728761 : f32
    %31 = vector.broadcast %cst_19 : f32 to vector<2x128xf32>
    %32 = arith.mulf %30, %31 : vector<2x128xf32>
    %cst_20 = arith.constant 0.501960814 : f32
    %33 = vector.broadcast %cst_20 : f32 to vector<2x128xf32>
    %34 = arith.addf %32, %33 : vector<2x128xf32>
    %35 = arith.subf %5, %29 : vector<2x128xf32>
    %cst_21 = arith.constant 0.626555919 : f32
    %36 = vector.broadcast %cst_21 : f32 to vector<2x128xf32>
    %37 = arith.mulf %35, %36 : vector<2x128xf32>
    %cst_22 = arith.constant 0.501960814 : f32
    %38 = vector.broadcast %cst_22 : f32 to vector<2x128xf32>
    %39 = arith.addf %37, %38 : vector<2x128xf32>
    %c0_23 = arith.constant 0 : index
    %c0_24 = arith.constant 0 : index
    %c0_25 = arith.constant 0 : index
    %c0_26 = arith.constant 0 : index
    %40 = vector.load %arg3[%c0_23, %c0_24, %c0_25, %c0_26] : memref<1x3x2x128xf32, #tpu.memory_space<vmem>>, vector<1x1x2x128xf32>
    %41 = vector.shape_cast %40 : vector<1x1x2x128xf32> to vector<2x128xf32>
    %42 = vector.shape_cast %29 : vector<2x128xf32> to vector<1x1x2x128xf32>
    tpu.vector_store %arg3[%c0_23, %c0_24, %c0_25, %c0_26], %42 {strides = array<i32>} : memref<1x3x2x128xf32, #tpu.memory_space<vmem>>, vector<1x1x2x128xf32>,
    %c0_27 = arith.constant 0 : index
    %c1_28 = arith.constant 1 : index
    %c0_29 = arith.constant 0 : index
    %c0_30 = arith.constant 0 : index
    %43 = vector.load %arg3[%c0_27, %c1_28, %c0_29, %c0_30] : memref<1x3x2x128xf32, #tpu.memory_space<vmem>>, vector<1x1x2x128xf32>
    %44 = vector.shape_cast %43 : vector<1x1x2x128xf32> to vector<2x128xf32>
    %45 = vector.shape_cast %34 : vector<2x128xf32> to vector<1x1x2x128xf32>
    tpu.vector_store %arg3[%c0_27, %c1_28, %c0_29, %c0_30], %45 {strides = array<i32>} : memref<1x3x2x128xf32, #tpu.memory_space<vmem>>, vector<1x1x2x128xf32>,
    %c0_31 = arith.constant 0 : index
    %c2_32 = arith.constant 2 : index
    %c0_33 = arith.constant 0 : index
    %c0_34 = arith.constant 0 : index
    %46 = vector.load %arg3[%c0_31, %c2_32, %c0_33, %c0_34] : memref<1x3x2x128xf32, #tpu.memory_space<vmem>>, vector<1x1x2x128xf32>
    %47 = vector.shape_cast %46 : vector<1x1x2x128xf32> to vector<2x128xf32>
    %48 = vector.shape_cast %39 : vector<2x128xf32> to vector<1x1x2x128xf32>
    tpu.vector_store %arg3[%c0_31, %c2_32, %c0_33, %c0_34], %48 {strides = array<i32>} : memref<1x3x2x128xf32, #tpu.memory_space<vmem>>, vector<1x1x2x128xf32>,
    return
  }
  func.func @transform_0(%arg0: i32, %arg1: i32) -> (i32, i32, i32, i32) {
    %c0_i32 = arith.constant 0 : i32
    %c0_i32_0 = arith.constant 0 : i32
    %c0_i32_1 = arith.constant 0 : i32
    return %arg0, %c0_i32, %arg1, %c0_i32_0 : i32, i32, i32, i32
  }
  func.func @transform_1(%arg0: i32, %arg1: i32) -> (i32, i32, i32, i32) {
    %c0_i32 = arith.constant 0 : i32
    %c0_i32_0 = arith.constant 0 : i32
    %c0_i32_1 = arith.constant 0 : i32
    return %arg0, %c0_i32, %arg1, %c0_i32_0 : i32, i32, i32, i32
  }
}

</mosaic_0001>

<bundles_post_ra>
// kernel: tpu_custom_call.1
= control target key start
LH: loop header
LB: loop body
LE: loop exit
PB: predicated region body
PF: predicated region fallthrough
CT: control target
= control target key end

     0   :  { %6 = vsyncpa [#allocation3], 0  ;;  %s636_s0 = inlined_call_operand.hbm [shape: f32[2,3,2,128], index: 0, kind: input, shape index: {}]   ;;  %s637_s1 = inlined_call_operand.hbm [shape: f32[2,3,2,128], index: 1, kind: output, shape index: {}]  }
   0x1   :  { %8 = vsyncpa [#allocation3 + $0x1], 0 }
   0x2   :  { %9 = vsyncpa [#allocation4], 0 }
   0x3   :  { %11 = vsyncpa [#allocation4 + $0x1], 0  ;;  %s490_s6 = smov 0   ;;  %s492_s7 = smov 0  }
   0x4   :  { %s494_s8 = smov 0   ;;  %s496_s9 = smov 0  }
   0x5   :  { %s498_s10 = smov 0   ;;  %s500_s11 = smov 0  }
   0x6 LB: > { %s281_s12 = sadd.s32 4294967295, %s472_s11   ;;  %s282_s13 = sadd.s32 4294967294, %s472_s11   ;;  %s472_s11 = sphi %s500_s11, %s17_s11   ;;  %s468_s10 = sphi %s498_s10, %s648_s10   ;;  %s464_s9 = sphi %s496_s9, %s647_s9   ;;  %s460_s8 = sphi %s494_s8, %s646_s8   ;;  %s456_s7 = sphi %s492_s7, %s645_s7   ;;  %s452_s6 = sphi %s490_s6, %s644_s6  }
   0x7   : > { %s29_s14 = sadd.s32 1, %s468_s10  ;;  %s38_s15 = sadd.s32 1, %s460_s8 }
   0x8   : > { %p31_p0 = scmp.ge.s32.totalorder %s29_s14, 2  ;;  %p45_p1 = scmp.ne.s32.totalorder %s460_s8, %s456_s7 }
   0x9   : > { %p46_p2 = scmp.eq.s32.totalorder %s472_s11, 0  ;;  %p51_p3 = scmp.ne.s32.totalorder %s456_s7, %s452_s6 }
   0xa   : > { %s650_s14 = smov (%p31_p0, %s29_s14), 0  ;;  %p52_p5 = scmp.eq.s32.totalorder %s281_s12, 0 }
   0xb   : > { %p531_p4 = por %p46_p2, %p45_p1  ;;  %s33_s17 = ssub.s32 %s468_s10, %s650_s14 }
   0xc   : > { %p77_p6 = scmp.eq.s32.totalorder %s281_s12, 1  ;;  %p36_p7 = scmp.eq.s32.totalorder %s33_s17, 0 }
   0xd   : > { %p537_p8 = por %p52_p5, %p51_p3  ;;  %p83_p10 = scmp.eq.s32.totalorder %s282_s13, 1 }
   0xe   : > { %p541_p9 = por %p77_p6, %p45_p1  ;;  %p310_p13 = scmp.lt.s32.totalorder %s472_s11, 2 }
   0xf   : > { %s546_s20 = scalar_select %p36_p7, %s460_s8, %s38_s15  }
  0x10   : > { %p548_p11 = por %p83_p10, %p51_p3  ;;  %s103_s22 = sand.u32 1, %s460_s8  }
  0x11   : > { %s294_s23 = smul.u32 6, %s103_s22  ;;  %p558_p0 = pnand %p310_p13, %p531_p4 }
  0x12   : > { %s295_s24 = smul.u32 96, %s468_s10  ;;  %p286_p1 = scmp.ge.s32.totalorder %s472_s11, 1 }
  0x13   : > { %s107_s29 = scalar_lea.vmem [#allocation2], %s294_s23  ;;  %s104_s2 = scalar_lea.sflag [#allocation3], %s103_s22 }
  0x14   : > { %s114_s28 = scalar_lea.hbm %s636_s0, %s295_s24  ;;  %s115_s30 = sshll.u32 %s107_s29, 4  ;;  %s116_s30 = int_to_ptr.vmem [resolvable:$true] %s115_s30 }
  0x15   : > { %p366_p2 = pneg %p558_p0  ;;  %s377_s3 = scalar_lea.vmem %s116_s30, 96 }
  0x16   : > { %p378_p3 = scmp.ne.s32.totalorder %s116_s30, %s377_s3  ;;  %s474_s4 = smov [#allocation2]  }
  0x17   : > { %s382_s5 = sshll.u32 %s474_s4, 4  ;;  %s383_s5 = int_to_ptr.vmem [resolvable:$false] %s382_s5 }
  0x18   : > { %p380_p5 = pnand %p378_p3, %p366_p2  ;;  %s384_s12 = scalar_lea.vmem %s383_s5, 192 }
  0x19   : > { %p385_p4 = scmp.lt.s32.totalorder %s116_s30, %s383_s5  ;;  %p386_p7 = scmp.lt.s32.totalorder %s384_s12, %s377_s3 }
  0x1a   : > { %p381_p6 = pneg %p380_p5 }
  0x1b   : > { %p387_p10 = por %p386_p7, %p385_p4 }
  0x1d   : > { %p388_p13 = pnand %p387_p10, %p381_p6 }
  0x1f   : > { %391 = shalt.err (!%p388_p13)
}
  0x20   : > { %s475_s13 = smov 32   ;;  %s476_s15 = smov 2  }
  0x21   : > { %305 = dma.hbm_to_vmem [thread:$0]  (!%p558_p0), %s114_s28, 96, %s116_s30, %s104_s2, %s475_s13, %s475_s13, %s476_s15  }
  0x22   : > { %p123_p12 = scmp.lt.s32.totalorder %s472_s11, 3 }
  0x24   : > { %p124_p2 = pnand %p286_p1, %p123_p12 }
  0x25   : > { %s574_s16 = sand.u32 (!%p124_p2), 1, %s456_s7  }
  0x26   : > { %127 = sbr.rel (%p124_p2) target bundleno = 79 (0x4f), region = 24  ;;  %s130_s22 = scalar_lea.sflag (!%p124_p2), [#allocation3], %s574_s16 }
  0x27   : > { %s296_s17 = smul.u32 (!%p124_p2), 6, %s574_s16 }
  0x29   : > { %s133_s23 = scalar_lea.vmem (!%p124_p2), [#allocation2], %s296_s17 }
  0x2b   : > { %443 = dma.done.wait (%p537_p8), %s130_s22, 96  }
  0x2c   : > { %445 = vsyncadd (%p537_p8), %s130_s22, 4294967200  ;;  %v152_v0 = vld [vmem:[%s133_s23] sm:$0x3]  ;;  %v287_v1 = vld [vmem:[%s133_s23 + $0x2] sm:$0x3]  ;;  %s151_s18 = scalar_lea.vmem [#allocation5], %s296_s17 }
  0x2d   : > { %v288_v2 = vld [vmem:[%s133_s23 + $0x4] sm:$0x3]  ;;  %v153_v3 = vmax.f32 %v152_v0, 0.0  ;;  %v157_v4 = vmax.f32 %v287_v1, 0.0  ;;  %s196_s24 = sshll.u32 %s151_s18, 4  ;;  %s297_s25 = smul.u32 96, %s464_s9  ;;  %s583_s24 = int_to_ptr.vmem [resolvable:$true] %s196_s24 }
  0x2e   : > { %v161_v5 = vmax.f32 %v288_v2, 0.0  ;;  %s182_s29 = scalar_lea.sflag [#allocation4], %s574_s16  ;;  %s392_s30 = scalar_lea.vmem %s583_s24, 96 }
  0x2f   : > { %v154_v6 = vmin.f32 %v153_v3, 1.0  ;;  %v158_v7 = vmin.f32 %v157_v4, 1.0  ;;  %s588_s28 = scalar_lea.hbm %s637_s1, %s297_s25  ;;  %p393_p8 = scmp.ne.s32.totalorder %s583_s24, %s392_s30 }
  0x30   : > { %v162_v8 = vmin.f32 %v161_v5, 1.0  ;;  %s477_s9 = smov [#allocation5]  }
  0x31   : > { %v163_v9 = vmul.f32 0.299, %v154_v6  ;;  %v164_v10 = vmul.f32 0.587, %v158_v7  ;;  %p394_p12 = pnand %p393_p8, %p541_p9  ;;  %s396_s2 = sshll.u32 %s477_s9, 4  ;;  %s397_s2 = int_to_ptr.vmem [resolvable:$false] %s396_s2 }
  0x32   : > { %v166_v11 = vmul.f32 0.114, %v162_v8  ;;  %s398_s3 = scalar_lea.vmem %s397_s2, 192  ;;  %p399_p1 = scmp.lt.s32.totalorder %s583_s24, %s397_s2 }
  0x33   : > { %v165_v12 = vadd.f32 %v164_v10, %v163_v9  ;;  %p395_p0 = pneg %p394_p12  ;;  %p400_p3 = scmp.lt.s32.totalorder %s398_s3, %s392_s30 }
  0x35   : > { %v167_v13 = vadd.f32 %v166_v11, %v165_v12  ;;  %p401_p5 = por %p400_p3, %p399_p1 }
  0x37   : > { %v168_v14 = vmul.f32 0.85882354, %v167_v13  ;;  %p402_p6 = pnand %p401_p5, %p395_p0 }
  0x39   : > { %v169_v15 = vadd.f32 0.0627451, %v168_v14 }
  0x3b   : > { %176 = vst [vmem:[%s151_s18] sm:$0x3] %v169_v15  ;;  %v170_v16 = vsub.f32 %v162_v8, %v169_v15  ;;  %v173_v17 = vsub.f32 %v154_v6, %v169_v15 }
  0x3d   : > { %v171_v18 = vmul.f32 0.49572876, %v170_v16  ;;  %v174_v19 = vmul.f32 0.6265559, %v173_v17 }
  0x3f   : > { %v172_v20 = vadd.f32 0.5019608, %v171_v18  ;;  %v175_v21 = vadd.f32 0.5019608, %v174_v19 }
  0x41   : > { %289 = vst [vmem:[%s151_s18 + $0x2] sm:$0x3] %v172_v20  ;;  %290 = vst [vmem:[%s151_s18 + $0x4] sm:$0x3] %v175_v21 }
  0x42   : > { %405 = shalt.err (!%p402_p6)
}
  0x43   : > { %s406_s4 = scalar_lea.hbm %s588_s28, 96  ;;  %s410_s13 = scalar_lea.hbm %s637_s1, 192 }
  0x44   : > { %p407_p4 = scmp.ne.s32.totalorder %s588_s28, %s406_s4  ;;  %p411_p13 = scmp.lt.s32.totalorder %s588_s28, %s637_s1 }
  0x45   : > { %p412_p2 = scmp.lt.s32.totalorder %s410_s13, %s406_s4 }
  0x46   : > { %p408_p7 = pnand %p407_p4, %p541_p9 }
  0x47   : > { %p413_p8 = por %p412_p2, %p411_p13 }
  0x48   : > { %p409_p10 = pneg %p408_p7 }
  0x4a   : > { %p414_p12 = pnand %p413_p8, %p409_p10 }
  0x4c   : > { %417 = shalt.err (!%p414_p12)
}
  0x4d   : > { %s478_s22 = smov 32   ;;  %s479_s23 = smov 2  }
  0x4e   : > { %300 = dma.vmem_to_hbm [thread:$0]  (%p541_p9), %s583_s24, 96, %s588_s28, %s182_s29, %s478_s22, %s478_s22, %s479_s23  }
  0x4f PF: > { %s211_s18 = sand.u32 1, %s452_s6   ;;  %p643_p0 = scmp.ge.s32.totalorder %s472_s11, 2 }
  0x50   : > { %s212_s25 = scalar_lea.sflag [#allocation4], %s211_s18 }
  0x51   : > { %p307_p1 = pnand %p643_p0, %p548_p11 }
  0x53   : > { %p308_p3 = pneg %p307_p1 }
  0x55   : > { %447 = dma.done.wait (%p308_p3), %s212_s25, 96  }
  0x56   : > { %449 = vsyncadd (%p308_p3), %s212_s25, 4294967200  ;;  %s17_s11 = sadd.s32 1, %s472_s11   ;;  %s644_s6 = smov %s456_s7 }
  0x57   : > { %p14_p5 = scmp.ge.s32.totalorder %s17_s11, 4   ;;  %s645_s7 = smov %s460_s8 }
  0x58   : > { %s646_s8 = smov %s546_s20  ;;  %s647_s9 = smov %s468_s10 }
  0x59   : > { %s648_s10 = smov %s650_s14  ;;  %16 = sbr.rel (!%p14_p5) target bundleno = 6 (0x6), region = 73 }
  0x5e   :  { %217 = vsyncpa [#allocation3], 1 }
  0x5f   :  { %219 = vsyncpa [#allocation3 + $0x1], 1 }
  0x60   :  { %220 = vsyncpa [#allocation4], 1 }
  0x61   :  { %222 = vsyncpa [#allocation4 + $0x1], 1 }

</bundles_post_ra>
